<compile_context>
chip_gen: v7x
topology: tpu7x:2x2x1
jax: 0.10.0
libtpu: 0.0.40
codegen_flags: <defaults>
</compile_context>

<pallas_src>
import functools

import jax
import jax.numpy as jnp
from jax import lax
from jax.experimental import pallas as pl
from jax.experimental.pallas import tpu as pltpu


_UNROLL_H = 64  # fully unroll the shift loop for H <= this; group fori_loop otherwise


def _neg_value(dtype):
    if jnp.issubdtype(dtype, jnp.floating):
        return jnp.asarray(-jnp.inf, dtype)
    return jnp.asarray(jnp.iinfo(dtype).min, dtype)


def _tp_kernel(maxd_ref, x_ref, thr_ref, o_ref, *, H, W, L):
    # maxd_ref: (B,)    int32 SMEM — per-batch max valid downward shift
    # x_ref:    (TC, L) one (batch, channel-tile) block, rows flattened into lanes
    # thr_ref:  (1,  L) int32: max valid downward shift per pixel
    # o_ref:    (TC, L)
    x = x_ref[...]
    thr = thr_ref[...]
    neg = _neg_value(x.dtype)

    acc = x  # d = 0 (the pixel itself) is always in the window

    if H <= _UNROLL_H:
        # Fully unrolled: H-1 independent static-shift rolls (no carried XLU
        # dependency; rolls pipeline against the VALU selects/maxes).
        for d in range(1, H):
            shifted = pltpu.roll(x, L - d * W, axis=1)   # x[h+d, w]; wrap is masked
            acc = jnp.maximum(acc, jnp.where(thr >= d, shifted, neg))
    else:
        # Data-bounded group loop: one carried 4-row roll per group; the other
        # three candidates are independent static rolls of the group base.
        # Shifts d > max_d (or wrapping past the image) are masked by thr.
        b = pl.program_id(0)
        max_d = maxd_ref[b]
        n_groups = (max_d + 3) // 4

        def body(g, carry):
            acc, base = carry
            d0 = 4 * g
            s1 = pltpu.roll(base, L - 1 * W, axis=1)
            s2 = pltpu.roll(base, L - 2 * W, axis=1)
            s3 = pltpu.roll(base, L - 3 * W, axis=1)
            s4 = pltpu.roll(base, L - 4 * W, axis=1)   # also next group's base
            c1 = jnp.where(thr >= d0 + 1, s1, neg)
            c2 = jnp.where(thr >= d0 + 2, s2, neg)
            c3 = jnp.where(thr >= d0 + 3, s3, neg)
            c4 = jnp.where(thr >= d0 + 4, s4, neg)
            acc = jnp.maximum(
                acc, jnp.maximum(jnp.maximum(c1, c2), jnp.maximum(c3, c4)))
            return acc, s4

        acc, _ = lax.fori_loop(0, n_groups, body, (acc, x))

    o_ref[...] = acc.astype(o_ref.dtype)


def _pick_c_tile(C, lanes, itemsize, budget_bytes=2 << 20):
    """Largest channel tile dividing C, multiple of the dtype sublane tile,
    within a soft VMEM budget for one x tile."""
    if C * lanes * itemsize <= budget_bytes:
        return C
    sub = max(8, 32 // itemsize)          # 8 f32, 16 bf16, 32 int8/fp8
    cands = [tc for tc in range(sub, C, sub) if C % tc == 0]
    for tc in reversed(cands):            # biggest first
        if tc * lanes * itemsize <= budget_bytes:
            return tc
    if cands:
        return cands[0]                   # smallest legal tile (over budget)
    return C


def tp_layer(x, offset):
    """Pallas implementation of TPLayer.forward(x, offset)."""
    B, C, H, W = x.shape
    orig_dtype = x.dtype
    if orig_dtype == jnp.bool_:
        x = x.astype(jnp.int32)
    compute_dtype = x.dtype

    HW = H * W
    L = ((HW + 127) // 128) * 128  # lane-pad to a multiple of 128

    # Pre-floored int32 threshold = max valid downward shift per pixel:
    #   thr[b, h, w] = min(floor(offset[b, h, w]), H - 1 - h)
    off_i = jnp.floor(offset.astype(jnp.float32)).astype(jnp.int32)       # (B, H, W)
    rows_left = (H - 1) - jnp.arange(H, dtype=jnp.int32)[None, :, None]   # (1, H, 1)
    thr2d = jnp.minimum(off_i, rows_left).reshape(B, HW)                  # (B, HW)
    # Per-batch bound on the shift loop (scalar-prefetched into SMEM).
    maxd = jnp.maximum(jnp.max(thr2d, axis=1), 0).astype(jnp.int32)       # (B,)

    x_flat = x.reshape(B, C, HW)  # lane-dense view: rows flattened into lanes
    if L != HW:
        # Padded lanes correspond to h+d >= H and are always masked by thr;
        # they are sliced off before returning.
        x_flat = jnp.pad(x_flat, ((0, 0), (0, 0), (0, L - HW)))
        thr2d = jnp.pad(thr2d, ((0, 0), (0, L - HW)), constant_values=-1)
    thr = thr2d.reshape(B, 1, L)

    TC = _pick_c_tile(C, L, jnp.dtype(compute_dtype).itemsize)
    # Prefer an even total grid so both v7x TensorCores get work.
    while (B * (C // TC)) % 2 == 1 and TC % 2 == 0 and TC > 8:
        TC //= 2
    grid = (B, C // TC)

    out = pl.pallas_call(
        functools.partial(_tp_kernel, H=H, W=W, L=L),
        out_shape=jax.ShapeDtypeStruct((B, C, L), compute_dtype),
        grid_spec=pltpu.PrefetchScalarGridSpec(
            num_scalar_prefetch=1,
            grid=grid,
            in_specs=[
                pl.BlockSpec((None, TC, L), lambda b, c, maxd: (b, c, 0)),
                pl.BlockSpec((None, 1, L), lambda b, c, maxd: (b, 0, 0)),
            ],
            out_specs=pl.BlockSpec((None, TC, L), lambda b, c, maxd: (b, c, 0)),
        ),
        compiler_params=pltpu.CompilerParams(
            dimension_semantics=("parallel", "parallel"),
            vmem_limit_bytes=32 * 1024 * 1024),
    )(maxd, x_flat, thr)

    out = out[..., :HW].reshape(B, C, H, W)
    return out.astype(orig_dtype)


def _reference(x, offset):
    """Pure-JAX NCHW reference (same semantics, independent of the lane trick)."""
    B, C, H, W = x.shape
    off_i = jnp.maximum(jnp.floor(offset.astype(jnp.float32)).astype(jnp.int32), 0)
    neg = _neg_value(x.dtype)
    acc = x
    for d in range(1, H):
        shifted = jnp.concatenate(
            [x[:, :, d:, :], jnp.full((B, C, d, W), neg, x.dtype)], axis=2)
        valid = (off_i >= d)[:, None, :, :]
        acc = jnp.maximum(acc, jnp.where(valid, shifted, neg))
    return acc


def _check(key, shape, dtype):
    B, C, H, W = shape
    kx, ko = jax.random.split(key)
    x = jax.random.normal(kx, (B, C, H, W), dtype=jnp.float32).astype(dtype)
    offset = jax.random.uniform(ko, (B, H, W), minval=0.0, maxval=float(H),
                                dtype=jnp.float32)
    out = jax.block_until_ready(tp_layer(x, offset))
    expected = _reference(x, offset)
    assert out.shape == (B, C, H, W)
    assert out.dtype == dtype
    assert jnp.array_equal(out, expected), f"mismatch for shape={shape} dtype={dtype}"


if __name__ == "__main__":
    key = jax.random.PRNGKey(0)
    k1, k2, k3, k4 = jax.random.split(key, 4)

    # Small H, lane-aligned HW (fully unrolled path).
    _check(k1, (2, 4, 16, 16), jnp.float32)
    # Small H, HW not a multiple of 128 (exercises lane padding).
    _check(k2, (2, 8, 10, 12), jnp.float32)
    # bf16 (dtype-aware sublane tiling, bf16 rolls/maxes).
    _check(k3, (2, 16, 16, 16), jnp.bfloat16)
    # Large H (> _UNROLL_H): group-of-4 fori_loop bounded by scalar-prefetched
    # per-batch max offset.
    _check(k4, (1, 8, 72, 8), jnp.float32)

    print("KERNEL_OK")
</pallas_src>

<mosaic_0001>
module attributes {stable_mosaic.version = 11 : i64} {
  func.func @_tp_kernel(%arg0: i32, %arg1: i32, %arg2: memref<2xi32, #tpu.memory_space<smem>>, %arg3: memref<1x4x256xf32, #tpu.memory_space<vmem>>, %arg4: memref<1x1x256xi32, #tpu.memory_space<vmem>>, %arg5: memref<1x4x256xf32, #tpu.memory_space<vmem>>) attributes {dimension_semantics = [#tpu.dimension_semantics<parallel>, #tpu.dimension_semantics<parallel>], iteration_bounds = array<i64: 2, 1>, scalar_prefetch = 1 : i64, scratch_operands = 0 : i64, tpu.core_type = #tpu.core_type<tc>, window_params = [{transform_indices = @transform_0, window_bounds = array<i64: 1, 4, 256>}, {transform_indices = @transform_1, window_bounds = array<i64: 1, 1, 256>}, {transform_indices = @transform_2, window_bounds = array<i64: 1, 4, 256>}]} {
    %c0 = arith.constant 0 : index
    %c0_0 = arith.constant 0 : index
    %c0_1 = arith.constant 0 : index
    %0 = vector.load %arg3[%c0, %c0_0, %c0_1] : memref<1x4x256xf32, #tpu.memory_space<vmem>>, vector<1x4x256xf32>
    %1 = vector.shape_cast %0 : vector<1x4x256xf32> to vector<4x256xf32>
    %c0_2 = arith.constant 0 : index
    %c0_3 = arith.constant 0 : index
    %c0_4 = arith.constant 0 : index
    %2 = vector.load %arg4[%c0_2, %c0_3, %c0_4] : memref<1x1x256xi32, #tpu.memory_space<vmem>>, vector<1x1x256xi32>
    %3 = vector.shape_cast %2 : vector<1x1x256xi32> to vector<1x256xi32>
    %c240_i32 = arith.constant 240 : i32
    %4 = tpu.dynamic_rotate %1 by %c240_i32 dim 1 : vector<4x256xf32>, i32 -> vector<4x256xf32>
    %c1_i32 = arith.constant 1 : i32
    %5 = vector.broadcast %c1_i32 : i32 to vector<1x256xi32>
    %6 = arith.cmpi sge, %3, %5 : vector<1x256xi32>
    %cst = arith.constant 0xFF800000 : f32
    %7 = vector.shape_cast %6 : vector<1x256xi1> to vector<1x256xi1>
    %8 = vector.broadcast %7 : vector<1x256xi1> to vector<4x256xi1>
    %9 = vector.broadcast %cst : f32 to vector<4x256xf32>
    %10 = arith.select %8, %4, %9 : vector<4x256xi1>, vector<4x256xf32>
    %11 = arith.maximumf %1, %10 : vector<4x256xf32>
    %c224_i32 = arith.constant 224 : i32
    %12 = tpu.dynamic_rotate %1 by %c224_i32 dim 1 : vector<4x256xf32>, i32 -> vector<4x256xf32>
    %c2_i32 = arith.constant 2 : i32
    %13 = vector.broadcast %c2_i32 : i32 to vector<1x256xi32>
    %14 = arith.cmpi sge, %3, %13 : vector<1x256xi32>
    %cst_5 = arith.constant 0xFF800000 : f32
    %15 = vector.shape_cast %14 : vector<1x256xi1> to vector<1x256xi1>
    %16 = vector.broadcast %15 : vector<1x256xi1> to vector<4x256xi1>
    %17 = vector.broadcast %cst_5 : f32 to vector<4x256xf32>
    %18 = arith.select %16, %12, %17 : vector<4x256xi1>, vector<4x256xf32>
    %19 = arith.maximumf %11, %18 : vector<4x256xf32>
    %c208_i32 = arith.constant 208 : i32
    %20 = tpu.dynamic_rotate %1 by %c208_i32 dim 1 : vector<4x256xf32>, i32 -> vector<4x256xf32>
    %c3_i32 = arith.constant 3 : i32
    %21 = vector.broadcast %c3_i32 : i32 to vector<1x256xi32>
    %22 = arith.cmpi sge, %3, %21 : vector<1x256xi32>
    %cst_6 = arith.constant 0xFF800000 : f32
    %23 = vector.shape_cast %22 : vector<1x256xi1> to vector<1x256xi1>
    %24 = vector.broadcast %23 : vector<1x256xi1> to vector<4x256xi1>
    %25 = vector.broadcast %cst_6 : f32 to vector<4x256xf32>
    %26 = arith.select %24, %20, %25 : vector<4x256xi1>, vector<4x256xf32>
    %27 = arith.maximumf %19, %26 : vector<4x256xf32>
    %c192_i32 = arith.constant 192 : i32
    %28 = tpu.dynamic_rotate %1 by %c192_i32 dim 1 : vector<4x256xf32>, i32 -> vector<4x256xf32>
    %c4_i32 = arith.constant 4 : i32
    %29 = vector.broadcast %c4_i32 : i32 to vector<1x256xi32>
    %30 = arith.cmpi sge, %3, %29 : vector<1x256xi32>
    %cst_7 = arith.constant 0xFF800000 : f32
    %31 = vector.shape_cast %30 : vector<1x256xi1> to vector<1x256xi1>
    %32 = vector.broadcast %31 : vector<1x256xi1> to vector<4x256xi1>
    %33 = vector.broadcast %cst_7 : f32 to vector<4x256xf32>
    %34 = arith.select %32, %28, %33 : vector<4x256xi1>, vector<4x256xf32>
    %35 = arith.maximumf %27, %34 : vector<4x256xf32>
    %c176_i32 = arith.constant 176 : i32
    %36 = tpu.dynamic_rotate %1 by %c176_i32 dim 1 : vector<4x256xf32>, i32 -> vector<4x256xf32>
    %c5_i32 = arith.constant 5 : i32
    %37 = vector.broadcast %c5_i32 : i32 to vector<1x256xi32>
    %38 = arith.cmpi sge, %3, %37 : vector<1x256xi32>
    %cst_8 = arith.constant 0xFF800000 : f32
    %39 = vector.shape_cast %38 : vector<1x256xi1> to vector<1x256xi1>
    %40 = vector.broadcast %39 : vector<1x256xi1> to vector<4x256xi1>
    %41 = vector.broadcast %cst_8 : f32 to vector<4x256xf32>
    %42 = arith.select %40, %36, %41 : vector<4x256xi1>, vector<4x256xf32>
    %43 = arith.maximumf %35, %42 : vector<4x256xf32>
    %c160_i32 = arith.constant 160 : i32
    %44 = tpu.dynamic_rotate %1 by %c160_i32 dim 1 : vector<4x256xf32>, i32 -> vector<4x256xf32>
    %c6_i32 = arith.constant 6 : i32
    %45 = vector.broadcast %c6_i32 : i32 to vector<1x256xi32>
    %46 = arith.cmpi sge, %3, %45 : vector<1x256xi32>
    %cst_9 = arith.constant 0xFF800000 : f32
    %47 = vector.shape_cast %46 : vector<1x256xi1> to vector<1x256xi1>
    %48 = vector.broadcast %47 : vector<1x256xi1> to vector<4x256xi1>
    %49 = vector.broadcast %cst_9 : f32 to vector<4x256xf32>
    %50 = arith.select %48, %44, %49 : vector<4x256xi1>, vector<4x256xf32>
    %51 = arith.maximumf %43, %50 : vector<4x256xf32>
    %c144_i32 = arith.constant 144 : i32
    %52 = tpu.dynamic_rotate %1 by %c144_i32 dim 1 : vector<4x256xf32>, i32 -> vector<4x256xf32>
    %c7_i32 = arith.constant 7 : i32
    %53 = vector.broadcast %c7_i32 : i32 to vector<1x256xi32>
    %54 = arith.cmpi sge, %3, %53 : vector<1x256xi32>
    %cst_10 = arith.constant 0xFF800000 : f32
    %55 = vector.shape_cast %54 : vector<1x256xi1> to vector<1x256xi1>
    %56 = vector.broadcast %55 : vector<1x256xi1> to vector<4x256xi1>
    %57 = vector.broadcast %cst_10 : f32 to vector<4x256xf32>
    %58 = arith.select %56, %52, %57 : vector<4x256xi1>, vector<4x256xf32>
    %59 = arith.maximumf %51, %58 : vector<4x256xf32>
    %c128_i32 = arith.constant 128 : i32
    %60 = tpu.dynamic_rotate %1 by %c128_i32 dim 1 : vector<4x256xf32>, i32 -> vector<4x256xf32>
    %c8_i32 = arith.constant 8 : i32
    %61 = vector.broadcast %c8_i32 : i32 to vector<1x256xi32>
    %62 = arith.cmpi sge, %3, %61 : vector<1x256xi32>
    %cst_11 = arith.constant 0xFF800000 : f32
    %63 = vector.shape_cast %62 : vector<1x256xi1> to vector<1x256xi1>
    %64 = vector.broadcast %63 : vector<1x256xi1> to vector<4x256xi1>
    %65 = vector.broadcast %cst_11 : f32 to vector<4x256xf32>
    %66 = arith.select %64, %60, %65 : vector<4x256xi1>, vector<4x256xf32>
    %67 = arith.maximumf %59, %66 : vector<4x256xf32>
    %c112_i32 = arith.constant 112 : i32
    %68 = tpu.dynamic_rotate %1 by %c112_i32 dim 1 : vector<4x256xf32>, i32 -> vector<4x256xf32>
    %c9_i32 = arith.constant 9 : i32
    %69 = vector.broadcast %c9_i32 : i32 to vector<1x256xi32>
    %70 = arith.cmpi sge, %3, %69 : vector<1x256xi32>
    %cst_12 = arith.constant 0xFF800000 : f32
    %71 = vector.shape_cast %70 : vector<1x256xi1> to vector<1x256xi1>
    %72 = vector.broadcast %71 : vector<1x256xi1> to vector<4x256xi1>
    %73 = vector.broadcast %cst_12 : f32 to vector<4x256xf32>
    %74 = arith.select %72, %68, %73 : vector<4x256xi1>, vector<4x256xf32>
    %75 = arith.maximumf %67, %74 : vector<4x256xf32>
    %c96_i32 = arith.constant 96 : i32
    %76 = tpu.dynamic_rotate %1 by %c96_i32 dim 1 : vector<4x256xf32>, i32 -> vector<4x256xf32>
    %c10_i32 = arith.constant 10 : i32
    %77 = vector.broadcast %c10_i32 : i32 to vector<1x256xi32>
    %78 = arith.cmpi sge, %3, %77 : vector<1x256xi32>
    %cst_13 = arith.constant 0xFF800000 : f32
    %79 = vector.shape_cast %78 : vector<1x256xi1> to vector<1x256xi1>
    %80 = vector.broadcast %79 : vector<1x256xi1> to vector<4x256xi1>
    %81 = vector.broadcast %cst_13 : f32 to vector<4x256xf32>
    %82 = arith.select %80, %76, %81 : vector<4x256xi1>, vector<4x256xf32>
    %83 = arith.maximumf %75, %82 : vector<4x256xf32>
    %c80_i32 = arith.constant 80 : i32
    %84 = tpu.dynamic_rotate %1 by %c80_i32 dim 1 : vector<4x256xf32>, i32 -> vector<4x256xf32>
    %c11_i32 = arith.constant 11 : i32
    %85 = vector.broadcast %c11_i32 : i32 to vector<1x256xi32>
    %86 = arith.cmpi sge, %3, %85 : vector<1x256xi32>
    %cst_14 = arith.constant 0xFF800000 : f32
    %87 = vector.shape_cast %86 : vector<1x256xi1> to vector<1x256xi1>
    %88 = vector.broadcast %87 : vector<1x256xi1> to vector<4x256xi1>
    %89 = vector.broadcast %cst_14 : f32 to vector<4x256xf32>
    %90 = arith.select %88, %84, %89 : vector<4x256xi1>, vector<4x256xf32>
    %91 = arith.maximumf %83, %90 : vector<4x256xf32>
    %c64_i32 = arith.constant 64 : i32
    %92 = tpu.dynamic_rotate %1 by %c64_i32 dim 1 : vector<4x256xf32>, i32 -> vector<4x256xf32>
    %c12_i32 = arith.constant 12 : i32
    %93 = vector.broadcast %c12_i32 : i32 to vector<1x256xi32>
    %94 = arith.cmpi sge, %3, %93 : vector<1x256xi32>
    %cst_15 = arith.constant 0xFF800000 : f32
    %95 = vector.shape_cast %94 : vector<1x256xi1> to vector<1x256xi1>
    %96 = vector.broadcast %95 : vector<1x256xi1> to vector<4x256xi1>
    %97 = vector.broadcast %cst_15 : f32 to vector<4x256xf32>
    %98 = arith.select %96, %92, %97 : vector<4x256xi1>, vector<4x256xf32>
    %99 = arith.maximumf %91, %98 : vector<4x256xf32>
    %c48_i32 = arith.constant 48 : i32
    %100 = tpu.dynamic_rotate %1 by %c48_i32 dim 1 : vector<4x256xf32>, i32 -> vector<4x256xf32>
    %c13_i32 = arith.constant 13 : i32
    %101 = vector.broadcast %c13_i32 : i32 to vector<1x256xi32>
    %102 = arith.cmpi sge, %3, %101 : vector<1x256xi32>
    %cst_16 = arith.constant 0xFF800000 : f32
    %103 = vector.shape_cast %102 : vector<1x256xi1> to vector<1x256xi1>
    %104 = vector.broadcast %103 : vector<1x256xi1> to vector<4x256xi1>
    %105 = vector.broadcast %cst_16 : f32 to vector<4x256xf32>
    %106 = arith.select %104, %100, %105 : vector<4x256xi1>, vector<4x256xf32>
    %107 = arith.maximumf %99, %106 : vector<4x256xf32>
    %c32_i32 = arith.constant 32 : i32
    %108 = tpu.dynamic_rotate %1 by %c32_i32 dim 1 : vector<4x256xf32>, i32 -> vector<4x256xf32>
    %c14_i32 = arith.constant 14 : i32
    %109 = vector.broadcast %c14_i32 : i32 to vector<1x256xi32>
    %110 = arith.cmpi sge, %3, %109 : vector<1x256xi32>
    %cst_17 = arith.constant 0xFF800000 : f32
    %111 = vector.shape_cast %110 : vector<1x256xi1> to vector<1x256xi1>
    %112 = vector.broadcast %111 : vector<1x256xi1> to vector<4x256xi1>
    %113 = vector.broadcast %cst_17 : f32 to vector<4x256xf32>
    %114 = arith.select %112, %108, %113 : vector<4x256xi1>, vector<4x256xf32>
    %115 = arith.maximumf %107, %114 : vector<4x256xf32>
    %c16_i32 = arith.constant 16 : i32
    %116 = tpu.dynamic_rotate %1 by %c16_i32 dim 1 : vector<4x256xf32>, i32 -> vector<4x256xf32>
    %c15_i32 = arith.constant 15 : i32
    %117 = vector.broadcast %c15_i32 : i32 to vector<1x256xi32>
    %118 = arith.cmpi sge, %3, %117 : vector<1x256xi32>
    %cst_18 = arith.constant 0xFF800000 : f32
    %119 = vector.shape_cast %118 : vector<1x256xi1> to vector<1x256xi1>
    %120 = vector.broadcast %119 : vector<1x256xi1> to vector<4x256xi1>
    %121 = vector.broadcast %cst_18 : f32 to vector<4x256xf32>
    %122 = arith.select %120, %116, %121 : vector<4x256xi1>, vector<4x256xf32>
    %123 = arith.maximumf %115, %122 : vector<4x256xf32>
    %c0_19 = arith.constant 0 : index
    %c0_20 = arith.constant 0 : index
    %c0_21 = arith.constant 0 : index
    %124 = vector.load %arg5[%c0_19, %c0_20, %c0_21] : memref<1x4x256xf32, #tpu.memory_space<vmem>>, vector<1x4x256xf32>
    %125 = vector.shape_cast %124 : vector<1x4x256xf32> to vector<4x256xf32>
    %126 = vector.shape_cast %123 : vector<4x256xf32> to vector<1x4x256xf32>
    tpu.vector_store %arg5[%c0_19, %c0_20, %c0_21], %126 {strides = array<i32>} : memref<1x4x256xf32, #tpu.memory_space<vmem>>, vector<1x4x256xf32>,
    return
  }
  func.func @transform_0(%arg0: i32, %arg1: i32, %arg2: memref<2xi32, #tpu.memory_space<smem>>) -> (i32, i32, i32) {
    %c0_i32 = arith.constant 0 : i32
    %c0_i32_0 = arith.constant 0 : i32
    return %arg0, %arg1, %c0_i32 : i32, i32, i32
  }
  func.func @transform_1(%arg0: i32, %arg1: i32, %arg2: memref<2xi32, #tpu.memory_space<smem>>) -> (i32, i32, i32) {
    %c0_i32 = arith.constant 0 : i32
    %c0_i32_0 = arith.constant 0 : i32
    %c0_i32_1 = arith.constant 0 : i32
    return %arg0, %c0_i32, %c0_i32_0 : i32, i32, i32
  }
  func.func @transform_2(%arg0: i32, %arg1: i32, %arg2: memref<2xi32, #tpu.memory_space<smem>>) -> (i32, i32, i32) {
    %c0_i32 = arith.constant 0 : i32
    %c0_i32_0 = arith.constant 0 : i32
    return %arg0, %arg1, %c0_i32 : i32, i32, i32
  }
}

</mosaic_0001>

<bundles_post_ra>
// kernel: tpu_custom_call.1
= control target key start
LH: loop header
LB: loop body
LE: loop exit
PB: predicated region body
PF: predicated region fallthrough
CT: control target
= control target key end

     0   :  { %s1450_s0 = inlined_call_operand.hbm [shape: s32[2], index: 0, kind: input, shape index: {}]   ;;  %s1451_s1 = inlined_call_operand.hbm [shape: f32[2,4,256], index: 1, kind: input, shape index: {}]   ;;  %s1452_s2 = inlined_call_operand.vmem [shape: s32[2,1,256], index: 2, kind: input, shape index: {}]   ;;  %s1453_s3 = inlined_call_operand.hbm [shape: f32[2,4,256], index: 3, kind: output, shape index: {}]  }
   0x1   :  { %s745_s14 = scalar_lea.hbm %s1450_s0, 16 }
   0x2   :  { %p746_p0 = scmp.ne.s32.totalorder %s1450_s0, %s745_s14  ;;  %p749_p1 = scmp.lt.u32.totalorder %s745_s14, %s1450_s0 }
   0x4   :  { %p751_p2 = pnand %p749_p1, %p746_p0 }
   0x6   :  { %754 = shalt.err (!%p751_p2)  }
   0x7   :  { %s871_s19 = smov [#allocation3]  }
   0x8   :  { %9 = dma.hbm_to_smem %s1450_s0, 16, %s871_s19, [#allocation2] }
   0x9   :  { %837 = dma.done.wait [#allocation2], 16 }
   0xa   :  { %838 = vsyncadd [#allocation2], 4294967280 }
   0xb   :  { %11 = sfence }
   0xc   :  { %12 = vsyncpa [#allocation5], 0 }
   0xd   :  { %14 = vsyncpa [#allocation5 + $0x1], 0 }
   0xe   :  { %15 = vsyncpa [#allocation6], 0 }
   0xf   :  { %17 = vsyncpa [#allocation6 + $0x1], 0  ;;  %s914_s22 = smov 0   ;;  %s916_s23 = smov 0  }
  0x10   :  { %s918_s24 = smov 0   ;;  %s920_s25 = smov 0  }
  0x11   :  { %s922_s26 = smov 0   ;;  %s924_s27 = smov 0  }
  0x12 LB: > { %s655_s0 = sadd.s32 4294967295, %s869_s27   ;;  %s656_s28 = sadd.s32 4294967294, %s869_s27   ;;  %s869_s27 = sphi %s924_s27, %s23_s27   ;;  %s865_s26 = sphi %s922_s26, %s1521_s26   ;;  %s861_s25 = sphi %s920_s25, %s1520_s25   ;;  %s857_s24 = sphi %s918_s24, %s1519_s24   ;;  %s853_s23 = sphi %s916_s23, %s1518_s23   ;;  %s849_s22 = sphi %s914_s22, %s1517_s22  }
  0x13   : > { %s35_s29 = sadd.s32 1, %s865_s26  ;;  %s44_s30 = sadd.s32 1, %s857_s24 }
  0x14   : > { %p37_p3 = scmp.ge.s32.totalorder %s35_s29, 2  ;;  %p51_p4 = scmp.ne.s32.totalorder %s857_s24, %s853_s23 }
  0x15   : > { %p52_p5 = scmp.eq.s32.totalorder %s869_s27, 0  ;;  %p57_p6 = scmp.ne.s32.totalorder %s853_s23, %s849_s22 }
  0x16   : > { %s1523_s29 = smov (%p37_p3, %s35_s29), 0  ;;  %p58_p8 = scmp.eq.s32.totalorder %s655_s0, 0 }
  0x17   : > { %p955_p7 = por %p52_p5, %p51_p4  ;;  %s39_s5 = ssub.s32 %s865_s26, %s1523_s29 }
  0x18   : > { %p109_p9 = scmp.eq.s32.totalorder %s655_s0, 1  ;;  %p42_p10 = scmp.eq.s32.totalorder %s39_s5, 0 }
  0x19   : > { %p961_p11 = por %p58_p8, %p57_p6  ;;  %p115_p13 = scmp.eq.s32.totalorder %s656_s28, 1 }
  0x1a   : > { %p965_p12 = por %p109_p9, %p51_p4  ;;  %p685_p2 = scmp.lt.s32.totalorder %s869_s27, 2 }
  0x1b   : > { %s970_s8 = scalar_select %p42_p10, %s857_s24, %s44_s30  }
  0x1c   : > { %s1457_s7 = scalar_select %p965_p12, 1, 0 }
  0x1d   : > { %p972_p0 = por %p115_p13, %p57_p6  ;;  %s135_s10 = sand.u32 1, %s857_s24  }
  0x1e   : > { %s659_s11 = sshll.u32 %s135_s10, 3  ;;  %s671_s12 = sshll.u32 %s865_s26, 7 }
  0x1f   : > { %s1458_s9 = scalar_select %p972_p0, 1, 0 }
  0x20   : > { %s983_s15 = scalar_lea.hbm %s1451_s1, %s671_s12  ;;  %s139_s16 = scalar_lea.vmem [#allocation4], %s659_s11 }
  0x21   : > { %s149_s17 = sshll.u32 %s139_s16, 4  ;;  %p989_p3 = pnand %p685_p2, %p955_p7  ;;  %s985_s17 = int_to_ptr.vmem [resolvable:$true] %s149_s17 }
  0x22   : > { %s136_s19 = scalar_lea.sflag [#allocation5], %s135_s10  ;;  %s755_s20 = scalar_lea.hbm %s983_s15, 128 }
  0x23   : > { %p756_p6 = scmp.ne.s32.totalorder %s983_s15, %s755_s20  ;;  %p757_p8 = pneg %p989_p3 }
  0x24   : > { %s760_s28 = scalar_lea.hbm %s1451_s1, 256  ;;  %p761_p7 = scmp.lt.u32.totalorder %s983_s15, %s1451_s1 }
  0x25   : > { %p758_p9 = pnand %p757_p8, %p756_p6  ;;  %p762_p13 = scmp.lt.u32.totalorder %s760_s28, %s755_s20 }
  0x26   : > { %p764_p1 = scmp.lt.u32.totalorder %s755_s20, %s983_s15 }
  0x27   : > { %p759_p10 = pneg %p758_p9  ;;  %p763_p2 = por %p762_p13, %p761_p7 }
  0x29   : > { %p765_p4 = por %p764_p1, %p763_p2 }
  0x2b   : > { %p766_p5 = pnand %p765_p4, %p759_p10 }
  0x2d   : > { %769 = shalt.err (!%p766_p5)
}
  0x2e   : > { %s770_s5 = scalar_lea.vmem %s985_s17, 128  ;;  %s872_s10 = smov [#allocation4]  }
  0x2f   : > { %p771_p6 = scmp.ne.s32.totalorder %s985_s17, %s770_s5  ;;  %s775_s11 = sshll.u32 %s872_s10, 4  ;;  %s776_s11 = int_to_ptr.vmem [resolvable:$false] %s775_s11 }
  0x30   : > { %s777_s12 = scalar_lea.vmem %s776_s11, 256  ;;  %p778_p12 = scmp.lt.s32.totalorder %s985_s17, %s776_s11 }
  0x31   : > { %p773_p9 = pnand %p771_p6, %p757_p8  ;;  %p779_p7 = scmp.lt.s32.totalorder %s777_s12, %s770_s5 }
  0x33   : > { %p774_p0 = pneg %p773_p9  ;;  %p780_p13 = por %p779_p7, %p778_p12 }
  0x35   : > { %p781_p1 = pnand %p780_p13, %p774_p0 }
  0x37   : > { %784 = shalt.err (!%p781_p1)
}
  0x38   : > { %680 = dma.hbm_to_vmem [thread:$0]  (!%p989_p3), %s983_s15, 128, %s985_s17, %s136_s19  }
  0x39   : > { %p1460_p4 = scmp.lt.s32.totalorder %s869_s27, 3  ;;  %p1461_p5 = scmp.ge.s32.totalorder %s869_s27, 1 }
  0x3b   : > { %p162_p8 = pnand %p1461_p5, %p1460_p4 }
  0x3c   : > { %s1025_s13 = sand.u32 (!%p162_p8), 1, %s853_s23  }
  0x3d   : > { %165 = sbr.rel (%p162_p8) target bundleno = 245 (0xf5), region = 28  ;;  %s663_s14 = sshll.u32 (!%p162_p8), %s1025_s13, 3 }
  0x3e   : > { %s168_s16 = scalar_lea.sflag (!%p162_p8), [#allocation5], %s1025_s13  ;;  %s171_s18 = scalar_lea.vmem (!%p162_p8), [#allocation4], %s663_s14 }
  0x44   : > { %840 = dma.done.wait (%p961_p11), %s168_s16, 128  }
  0x45   : > { %842 = vsyncadd (%p961_p11), %s168_s16, 4294967168  ;;  %v1035_v0 = vld [vmem:[%s171_s18] sm:$0xff]  ;;  %s873_s15 = smov 96   ;;  %s874_s17 = smov 112   ;;  %v209_v2 = vlaneseq  ;;  %v880_v8 = vmov 0  }
  0x46   : > { %233 = vrot.lane.b32.xlu1 %v1035_v0, %s873_s15  ;;  %205 = vrot.lane.b32.xlu0 %v1035_v0, %s874_s17  ;;  %v1041_v1 = vcombine.high %v1035_v0, %v1035_v0  ;;  %s875_s19 = smov 80   ;;  %s876_s6 = smov 64  }
  0x47   : > { %s877_s20 = smov 48   ;;  %s878_s21 = smov 32   ;;  %v217_v4 = vshrl.u32 %v209_v2, 7  ;;  %v1063_v5 = vand.u32 127, %v209_v2 }
  0x48   : > { %s879_s0 = smov 16   ;;  %p196_p11 = scmp.lt.s32.totalorder %s861_s25, 1 }
  0x49   : > { %v1066_v6 = vsub.s32 0, %v217_v4  ;;  %v1068_v7 = vsub.s32 1, %v217_v4  ;;  %vm237_vm5 = vcmp.lt.s32.totalorder %v1063_v5, 96  ;;  %vm263_vm8 = vcmp.lt.s32.totalorder %v1063_v5, 80  ;;  %s672_s11 = sshll.u32 %s861_s25, 7  ;;  %s195_s12 = scalar_lea.vmem [#allocation7], %s663_s14 }
  0x4a   : > { %259 = vrot.lane.b32.xlu0 %v1035_v0, %s875_s19  ;;  %235 = vrot.lane.b32.xlu1 %v1041_v1, %s873_s15  ;;  %s197_s28 = scalar_select %p196_p11, %s861_s25, 1  ;;  %vm211_vm9 = vcmp.lt.s32.totalorder %v1063_v5, 112  ;;  %vm289_vm15 = vcmp.lt.s32.totalorder %v1063_v5, 64 }
  0x4b   : > { %s559_s16 = sshll.u32 %s195_s12, 4  ;;  %p1514_p0 = scmp.ne.s32.totalorder %s1457_s7, 0  ;;  %s1403_s16 = int_to_ptr.vmem [resolvable:$true] %s559_s16 }
  0x4c   : > { %s665_s30 = sshll.u32 %s197_s28, 1  ;;  %s881_s25 = smov [#allocation7]  }
  0x4d   : > { %s199_s10 = scalar_lea.vmem %s1452_s2, %s665_s30  ;;  %s789_s14 = sshll.u32 %s881_s25, 4  ;;  %s790_s14 = int_to_ptr.vmem [resolvable:$false] %s789_s14 }
  0x4e   : > { %261 = vrot.lane.b32.xlu1 %v1041_v1, %s875_s19  ;;  %207 = vrot.lane.b32.xlu0 %v1041_v1, %s874_s17  ;;  %v1060_v3 = vld [vmem:[%s199_s10] sm:$0x3]  ;;  %s1401_s17 = scalar_lea.hbm %s1453_s3, %s672_s11  ;;  %s543_s19 = scalar_lea.sflag [#allocation6], %s1025_s13 }
  0x4f   : > { %vm240_vm0 = vcmp.ge.s32.totalorder %v1060_v3, 2  ;;  %vm266_vm1 = vcmp.ge.s32.totalorder %v1060_v3, 3  ;;  %vm427_vm2 = vcmp.ge.s32.totalorder %v1060_v3, 10  ;;  %vm214_vm3 = vcmp.ge.s32.totalorder %v1060_v3, 1  ;;  %p792_p2 = scmp.lt.s32.totalorder %s1403_s16, %s790_s14 }
  0x50   : > { %v241_v9 = vsel %vm240_vm0, 1, %v880_v8  ;;  %v267_v10 = vsel %vm266_vm1, 1, %v880_v8  ;;  %vm292_vm4 = vcmp.ge.s32.totalorder %v1060_v3, 4  ;;  %v1077_v11 = vsel %vm427_vm2, 1, %v880_v8 }
  0x51   : > { %v245_v14 = vrot.slane %v241_v9, %v1066_v6  ;;  %v249_v15 = vrot.slane %v241_v9, %v1068_v7  ;;  %vm446_vm6 = vcmp.ge.s32.totalorder %v1060_v3, 11  ;;  %v215_v16 = vsel %vm214_vm3, 1, %v880_v8 }
  0x52   : > { %287 = vrot.lane.b32.xlu1 %v1041_v1, %s876_s6  ;;  %285 = vrot.lane.b32.xlu0 %v1035_v0, %s876_s6  ;;  %v271_v17 = vrot.slane %v267_v10, %v1066_v6  ;;  %v275_v18 = vrot.slane %v267_v10, %v1068_v7  ;;  %vm408_vm7 = vcmp.ge.s32.totalorder %v1060_v3, 9  ;;  %v293_v19 = vsel %vm292_vm4, 1, %v880_v8  ;;  %s785_s6 = scalar_lea.vmem %s1403_s16, 128 }
  0x53   : > { %v432_v20 = vrot.slane %v1077_v11, %v1066_v6  ;;  %vm318_vm10 = vcmp.ge.s32.totalorder %v1060_v3, 5  ;;  %v436_v21 = vrot.slane %v1077_v11, %v1068_v7  ;;  %v1095_v22 = vsel %vm446_vm6, 1, %v880_v8  ;;  %p786_p12 = scmp.ne.s32.totalorder %s1403_s16, %s785_s6 }
  0x54   : > { %v219_v23 = vrot.slane %v215_v16, %v1066_v6  ;;  %v223_v24 = vrot.slane %v215_v16, %v1068_v7  ;;  %vm1099_vm11 = vcmp.eq.s32.totalorder %v245_v14, 1  ;;  %vm1103_vm12 = vcmp.eq.s32.totalorder %v249_v15, 1 }
  0x55   : > { %v1108_v29 = vsel %vm408_vm7, 1, %v880_v8  ;;  %v297_v30 = vrot.slane %v293_v19, %v1066_v6  ;;  %vm1111_vm13 = vcmp.eq.s32.totalorder %v271_v17, 1  ;;  %vm1115_vm14 = vcmp.eq.s32.totalorder %v275_v18, 1  ;;  %p787_p3 = pnand %p786_p12, %p1514_p0 }
  0x56   : > { %313 = vrot.lane.b32.xlu1 %v1041_v1, %s877_s20  ;;  %311 = vrot.lane.b32.xlu0 %v1035_v0, %s877_s20  ;;  %v301_v33 = vrot.slane %v293_v19, %v1068_v7  ;;  %v319_v34 = vsel %vm318_vm10, 1, %v880_v8  ;;  %v451_v35 = vrot.slane %v1095_v22, %v1066_v6  ;;  %v455_v36 = vrot.slane %v1095_v22, %v1068_v7  ;;  %s791_s20 = scalar_lea.vmem %s790_s14, 256 }
  0x57   : > { %vm315_vm0 = vcmp.lt.s32.totalorder %v1063_v5, 48  ;;  %vm1127_vm1 = vcmp.eq.s32.totalorder %v219_v23, 1  ;;  %vm1131_vm2 = vcmp.eq.s32.totalorder %v223_v24, 1  ;;  %v413_v39 = vrot.slane %v1108_v29, %v1066_v6  ;;  %p788_p10 = pneg %p787_p3  ;;  %p793_p6 = scmp.lt.s32.totalorder %s791_s20, %s785_s6 }
  0x58   : > { %vm344_vm3 = vcmp.ge.s32.totalorder %v1060_v3, 6  ;;  %vm1146_vm4 = vcmp.eq.s32.totalorder %v297_v30, 1  ;;  %v323_v45 = vrot.slane %v319_v34, %v1066_v6  ;;  %vm1159_vm6 = vcmp.eq.s32.totalorder %v301_v33, 1 }
  0x59   : > { %vm389_vm7 = vcmp.ge.s32.totalorder %v1060_v3, 8  ;;  %v327_v51 = vrot.slane %v319_v34, %v1068_v7  ;;  %v345_v52 = vsel %vm344_vm3, 1, %v880_v8  ;;  %v417_v27 = vrot.slane %v1108_v29, %v1068_v7  ;;  %p794_p9 = por %p793_p6, %p792_p2 }
  0x5a   : > { %339 = vrot.lane.b32.xlu1 %v1041_v1, %s878_s21  ;;  %337 = vrot.lane.b32.xlu0 %v1035_v0, %s878_s21  ;;  %v390_v61 = vsel %vm389_vm7, 1, %v880_v8  ;;  %v353_v14 = vrot.slane %v345_v52, %v1068_v7  ;;  %vm1287_vm3 = vcmp.eq.s32.totalorder %v413_v39, 1 }
  0x5b   : > { %vm1208_vm10 = vcmp.eq.s32.totalorder %v327_v51, 1  ;;  %v394_v16 = vrot.slane %v390_v61, %v1066_v6  ;;  %v398_v17 = vrot.slane %v390_v61, %v1068_v7  ;;  %vm1307_vm7 = vcmp.eq.s32.totalorder %v417_v27, 1  ;;  %p795_p7 = pnand %p794_p9, %p788_p10 }
  0x5e   : > { %365 = vrot.lane.b32.xlu1 %v1041_v1, %s879_s0  ;;  %363 = vrot.lane.b32.xlu0 %v1035_v0, %s879_s0 }
  0xb8   : > { %v234_v12 = vpop.permute.xlu1 %233  ;;  %v206_v13 = vpop.permute.xlu0 %205 }
  0xbc   : > { %v260_v25 = vpop.permute.xlu0 %259  ;;  %v236_v28 = vpop.permute.xlu1 %235 }
  0xbd   : > { %v1140_v40 = vsel %vm237_vm5, %v234_v12, %v236_v28  ;;  %v1144_v41 = vsel %vm237_vm5, %v236_v28, %v234_v12  ;;  %vm465_vm5 = vcmp.ge.s32.totalorder %v1060_v3, 12 }
  0xbe   : > { %v252_v53 = vsel %vm1099_vm11, %v1140_v40, -inf  ;;  %v253_v54 = vsel %vm1103_vm12, %v1144_v41, -inf  ;;  %vm341_vm11 = vcmp.lt.s32.totalorder %v1063_v5, 32 }
  0xbf   : > { %v256_v9 = vcombine.low %v252_v53, %v253_v54 }
  0xc0   : > { %v262_v42 = vpop.permute.xlu1 %261  ;;  %v208_v43 = vpop.permute.xlu0 %207 }
  0xc1   : > { %v1153_v46 = vsel %vm211_vm9, %v206_v13, %v208_v43  ;;  %v1157_v47 = vsel %vm211_vm9, %v208_v43, %v206_v13  ;;  %v1167_v49 = vsel %vm263_vm8, %v260_v25, %v262_v42  ;;  %v1171_v50 = vsel %vm263_vm8, %v262_v42, %v260_v25 }
  0xc2   : > { %v226_v55 = vsel %vm1127_vm1, %v1153_v46, -inf  ;;  %v227_v56 = vsel %vm1131_vm2, %v1157_v47, -inf  ;;  %vm1187_vm8 = vcmp.eq.s32.totalorder %v323_v45, 1  ;;  %vm370_vm9 = vcmp.ge.s32.totalorder %v1060_v3, 7 }
  0xc3   : > { %v230_v57 = vcombine.low %v226_v55, %v227_v56  ;;  %v278_v62 = vsel %vm1111_vm13, %v1167_v49, -inf  ;;  %v279_v63 = vsel %vm1115_vm14, %v1171_v50, -inf  ;;  %v349_v13 = vrot.slane %v345_v52, %v1066_v6 }
  0xc4   : > { %v288_v58 = vpop.permute.xlu1 %287  ;;  %v286_v59 = vpop.permute.xlu0 %285  ;;  %v371_v15 = vsel %vm370_vm9, 1, %v880_v8  ;;  %v282_v18 = vcombine.low %v278_v62, %v279_v63  ;;  %vm1247_vm13 = vcmp.eq.s32.totalorder %v432_v20, 1  ;;  %vm1254_vm14 = vcmp.eq.s32.totalorder %v436_v21, 1 }
  0xc5   : > { %v1201_v2 = vsel %vm289_vm15, %v286_v59, %v288_v58  ;;  %v1205_v4 = vsel %vm289_vm15, %v288_v58, %v286_v59  ;;  %v232_v10 = vmax.f32 %v1035_v0, %v230_v57  ;;  %vm1240_vm12 = vcmp.eq.s32.totalorder %v349_v13, 1 }
  0xc6   : > { %v304_v23 = vsel %vm1146_vm4, %v1201_v2, -inf  ;;  %v305_v24 = vsel %vm1159_vm6, %v1205_v4, -inf  ;;  %vm1258_vm15 = vcmp.eq.s32.totalorder %v353_v14, 1  ;;  %v375_v44 = vrot.slane %v371_v15, %v1066_v6 }
  0xc7   : > { %v258_v19 = vmax.f32 %v232_v10, %v256_v9  ;;  %v308_v42 = vcombine.low %v304_v23, %v305_v24  ;;  %v379_v45 = vrot.slane %v371_v15, %v1068_v7  ;;  %v466_v20 = vsel %vm465_vm5, 1, %v880_v8 }
  0xc8   : > { %v314_v25 = vpop.permute.xlu1 %313  ;;  %v312_v26 = vpop.permute.xlu0 %311  ;;  %vm1268_vm1 = vcmp.eq.s32.totalorder %v394_v16, 1  ;;  %vm1272_vm2 = vcmp.eq.s32.totalorder %v398_v17, 1  ;;  %vm367_vm4 = vcmp.lt.s32.totalorder %v1063_v5, 16  ;;  %vm1299_vm6 = vcmp.eq.s32.totalorder %v375_v44, 1 }
  0xc9   : > { %v1227_v28 = vsel %vm315_vm0, %v312_v26, %v314_v25  ;;  %v1231_v30 = vsel %vm315_vm0, %v314_v25, %v312_v26  ;;  %v284_v31 = vmax.f32 %v258_v19, %v282_v18  ;;  %vm484_vm0 = vcmp.ge.s32.totalorder %v1060_v3, 13 }
  0xca   : > { %v330_v32 = vsel %vm1187_vm8, %v1227_v28, -inf  ;;  %v331_v33 = vsel %vm1208_vm10, %v1231_v30, -inf  ;;  %v485_v59 = vsel %vm484_vm0, 1, %v880_v8  ;;  %vm1303_vm5 = vcmp.eq.s32.totalorder %v379_v45, 1 }
  0xcb   : > { %v310_v52 = vmax.f32 %v284_v31, %v308_v42  ;;  %v334_v53 = vcombine.low %v330_v32, %v331_v33  ;;  %v470_v62 = vrot.slane %v466_v20, %v1066_v6  ;;  %v402_v5 = vsel %vm1272_vm2, %v1035_v0, -inf }
  0xcc   : > { %v340_v11 = vpop.permute.xlu1 %339  ;;  %v338_v21 = vpop.permute.xlu0 %337  ;;  %v401_v10 = vsel %vm1268_vm1, %v1041_v1, -inf  ;;  %vm503_vm8 = vcmp.ge.s32.totalorder %v1060_v3, 14  ;;  %v474_v15 = vrot.slane %v466_v20, %v1068_v7  ;;  %v489_v16 = vrot.slane %v485_v59, %v1066_v6 }
  0xcd   : > { %v1278_v54 = vsel %vm341_vm11, %v338_v21, %v340_v11  ;;  %v1282_v55 = vsel %vm341_vm11, %v340_v11, %v338_v21  ;;  %v336_v12 = vmax.f32 %v310_v52, %v334_v53  ;;  %vm522_vm9 = vcmp.ge.s32.totalorder %v1060_v3, 15 }
  0xce   : > { %v356_v57 = vsel %vm1240_vm12, %v1278_v54, -inf  ;;  %v357_v58 = vsel %vm1258_vm15, %v1282_v55, -inf  ;;  %v405_v1 = vcombine.low %v401_v10, %v402_v5  ;;  %v420_v23 = vsel %vm1287_vm3, %v1157_v47, -inf }
  0xcf   : > { %v360_v60 = vcombine.low %v356_v57, %v357_v58  ;;  %v421_v24 = vsel %vm1307_vm7, %v1153_v46, -inf  ;;  %v493_v25 = vrot.slane %v485_v59, %v1068_v7  ;;  %v504_v26 = vsel %vm503_vm8, 1, %v880_v8 }
  0xd0   : > { %v366_v63 = vpop.permute.xlu1 %365  ;;  %v364_v9 = vpop.permute.xlu0 %363  ;;  %vm1337_vm10 = vcmp.eq.s32.totalorder %v451_v35, 1  ;;  %vm1344_vm11 = vcmp.eq.s32.totalorder %v455_v36, 1  ;;  %vm1348_vm12 = vcmp.eq.s32.totalorder %v470_v62, 1  ;;  %v439_v31 = vsel %vm1247_vm13, %v1144_v41, -inf }
  0xd1   : > { %v368_v13 = vsel %vm367_vm4, %v364_v9, %v366_v63  ;;  %v369_v14 = vsel %vm367_vm4, %v366_v63, %v364_v9  ;;  %v362_v18 = vmax.f32 %v336_v12, %v360_v60  ;;  %v440_v35 = vsel %vm1254_vm14, %v1140_v40, -inf }
  0xd2   : > { %v382_v17 = vsel %vm1299_vm6, %v368_v13, -inf  ;;  %v383_v0 = vsel %vm1303_vm5, %v369_v14, -inf  ;;  %vm1358_vm15 = vcmp.eq.s32.totalorder %v474_v15, 1  ;;  %v523_v22 = vsel %vm522_vm9, 1, %v880_v8 }
  0xd3   : > { %v386_v19 = vcombine.low %v382_v17, %v383_v0  ;;  %v424_v36 = vcombine.low %v420_v23, %v421_v24  ;;  %v508_v33 = vrot.slane %v504_v26, %v1066_v6  ;;  %v512_v34 = vrot.slane %v504_v26, %v1068_v7 }
  0xd4   : > { %v458_v41 = vsel %vm1337_vm10, %v1171_v50, -inf  ;;  %v459_v40 = vsel %vm1344_vm11, %v1167_v49, -inf  ;;  %vm1371_vm13 = vcmp.eq.s32.totalorder %v489_v16, 1  ;;  %vm1375_vm14 = vcmp.eq.s32.totalorder %v493_v25, 1 }
  0xd5   : > { %v388_v47 = vmax.f32 %v362_v18, %v386_v19  ;;  %v443_v38 = vcombine.low %v439_v31, %v440_v35  ;;  %v527_v43 = vrot.slane %v523_v22, %v1066_v6  ;;  %v531_v44 = vrot.slane %v523_v22, %v1068_v7 }
  0xd6   : > { %v477_v50 = vsel %vm1348_vm12, %v1205_v4, -inf  ;;  %v478_v49 = vsel %vm1358_vm15, %v1201_v2, -inf  ;;  %v462_v20 = vcombine.low %v458_v41, %v459_v40  ;;  %vm513_vm0 = vcmp.eq.s32.totalorder %v508_v33, 1 }
  0xd7   : > { %v407_v42 = vmax.f32 %v388_v47, %v405_v1  ;;  %vm514_vm1 = vcmp.eq.s32.totalorder %v512_v34, 1  ;;  %v496_v6 = vsel %vm1371_vm13, %v1231_v30, -inf  ;;  %v497_v7 = vsel %vm1375_vm14, %v1227_v28, -inf }
  0xd8   : > { %v481_v21 = vcombine.low %v477_v50, %v478_v49  ;;  %vm532_vm2 = vcmp.eq.s32.totalorder %v527_v43, 1  ;;  %vm533_vm3 = vcmp.eq.s32.totalorder %v531_v44, 1  ;;  %v515_v2 = vsel %vm513_vm0, %v1282_v55, -inf }
  0xd9   : > { %v426_v45 = vmax.f32 %v407_v42, %v424_v36  ;;  %v516_v48 = vsel %vm514_vm1, %v1278_v54, -inf  ;;  %v500_v51 = vcombine.low %v496_v6, %v497_v7  ;;  %v534_v53 = vsel %vm532_vm2, %v369_v14, -inf }
  0xda   : > { %v535_v56 = vsel %vm533_vm3, %v368_v13, -inf  ;;  %v519_v57 = vcombine.low %v515_v2, %v516_v48 }
  0xdb   : > { %v445_v11 = vmax.f32 %v426_v45, %v443_v38  ;;  %v538_v58 = vcombine.low %v534_v53, %v535_v56 }
  0xdd   : > { %v464_v4 = vmax.f32 %v445_v11, %v462_v20 }
  0xdf   : > { %v483_v52 = vmax.f32 %v464_v4, %v481_v21 }
  0xe1   : > { %v502_v30 = vmax.f32 %v483_v52, %v500_v51 }
  0xe3   : > { %v521_v28 = vmax.f32 %v502_v30, %v519_v57 }
  0xe5   : > { %v540_v59 = vmax.f32 %v521_v28, %v538_v58 }
  0xe7   : > { %541 = vst [vmem:[%s195_s12] sm:$0xff] %v540_v59 }
  0xe8   : > { %798 = shalt.err (!%p795_p7)
}
  0xe9   : > { %s799_s13 = scalar_lea.hbm %s1401_s17, 128  ;;  %s803_s28 = scalar_lea.hbm %s1453_s3, 256 }
  0xea   : > { %p800_p13 = scmp.ne.s32.totalorder %s1401_s17, %s799_s13  ;;  %p804_p5 = scmp.lt.u32.totalorder %s1401_s17, %s1453_s3 }
  0xeb   : > { %p805_p8 = scmp.lt.u32.totalorder %s803_s28, %s799_s13  ;;  %p807_p12 = scmp.lt.u32.totalorder %s799_s13, %s1401_s17 }
  0xec   : > { %p801_p1 = pnand %p800_p13, %p1514_p0 }
  0xed   : > { %p806_p11 = por %p805_p8, %p804_p5 }
  0xee   : > { %p802_p4 = pneg %p801_p1 }
  0xef   : > { %p808_p3 = por %p807_p12, %p806_p11 }
  0xf1   : > { %p809_p10 = pnand %p808_p3, %p802_p4 }
  0xf3   : > { %812 = shalt.err (!%p809_p10)
}
  0xf4   : > { %675 = dma.vmem_to_hbm [thread:$0]  (%p1514_p0), %s1403_s16, 128, %s1401_s17, %s543_s19  }
  0xf5 PF: > { %s571_s5 = sand.u32 1, %s849_s22   ;;  %p1515_p2 = scmp.ne.s32.totalorder %s1458_s9, 0 }
  0xf6   : > { %p1516_p6 = scmp.ge.s32.totalorder %s869_s27, 2  ;;  %s572_s10 = scalar_lea.sflag [#allocation6], %s571_s5 }
  0xf8   : > { %p682_p9 = pnand %p1516_p6, %p1515_p2 }
  0xfa   : > { %844 = dma.done.wait (!%p682_p9), %s572_s10, 128  }
  0xfb   : > { %846 = vsyncadd (!%p682_p9), %s572_s10, 4294967168  ;;  %s23_s27 = sadd.s32 1, %s869_s27   ;;  %s1517_s22 = smov %s853_s23 }
  0xfc   : > { %p20_p7 = scmp.ge.s32.totalorder %s23_s27, 4   ;;  %s1518_s23 = smov %s857_s24 }
  0xfd   : > { %s1519_s24 = smov %s970_s8  ;;  %s1520_s25 = smov %s865_s26 }
  0xfe   : > { %s1521_s26 = smov %s1523_s29  ;;  %22 = sbr.rel (!%p20_p7) target bundleno = 18 (0x12), region = 76 }
 0x105   :  { %577 = vsyncpa [#allocation5], 1 }
 0x106   :  { %579 = vsyncpa [#allocation5 + $0x1], 1 }
 0x107   :  { %580 = vsyncpa [#allocation6], 1 }
 0x108   :  { %582 = vsyncpa [#allocation6 + $0x1], 1 }

</bundles_post_ra>
